<compile_context>
chip_gen: v7x
topology: tpu7x:2x2x1
jax: 0.10.0
libtpu: 0.0.40
codegen_flags: <defaults>
</compile_context>

<pallas_src>
import functools

import jax
import jax.numpy as jnp
from jax.experimental import pallas as pl
from jax.experimental.pallas import tpu as pltpu


# ----------------------------------------------------------------------------
# helpers
# ----------------------------------------------------------------------------
def _vmem_limit_bytes():
    """Generation-aware scoped-VMEM budget (v5e/v6e: 128 MiB phys, v7x: 64 MiB)."""
    try:
        phys = pltpu.get_tpu_info().vmem_capacity_bytes
    except Exception:
        phys = 64 << 20                      # conservative (v7x-sized) fallback
    return int(min(phys // 2, 64 << 20))


def _pick_lane_tile(total, per_lane_bytes, budget_bytes, cap=4096):
    """Largest multiple-of-128 lane tile dividing `total` whose double-buffered
    activation blocks fit `budget_bytes`.  `total` must be a multiple of 128."""
    t_cap = (budget_bytes // (2 * per_lane_bytes)) // 128 * 128
    t_cap = max(128, min(cap, t_cap))
    t = min(total, t_cap)
    t = (t // 128) * 128
    while total % t != 0:
        t -= 128
    return t


# ----------------------------------------------------------------------------
# backbone kernel: im2col-free 3x3 conv (stand-in), bf16 streaming
# ----------------------------------------------------------------------------
def _backbone_kernel(xp_ref, w_ref, b_ref, o_ref, *, wp2, q):
    """3x3 stride-1 conv + ReLU; the im2col patches are formed in VMEM.

    xp_ref: (1, Cin, P) flattened zero-padded frame (bf16), P=(H+3)*(W+2)
    w_ref : (Cout, 9*Cin) bf16      b_ref: (Cout, 1) f32
    o_ref : (1, Cout, Q) bf16 on the (W+2)-strided row grid, Q = H*(W+2)
    """
    x = xp_ref[0].astype(jnp.float32)                          # (Cin, P)
    # tap(dh, dw) over the strided output grid is a *contiguous* lane slice
    # of the flattened padded image: offset = dh*(W+2) + dw.
    taps = [x[:, dh * wp2 + dw: dh * wp2 + dw + q]
            for dh in range(3) for dw in range(3)]             # 9 x (Cin, Q)
    patches = jnp.concatenate(taps, axis=0).astype(jnp.bfloat16)   # (9*Cin, Q)
    y = jnp.dot(w_ref[...], patches, preferred_element_type=jnp.float32)
    o_ref[0] = jnp.maximum(y + b_ref[...], 0.0).astype(o_ref.dtype)


def backbone_pallas(xp_flat, w_t, b_col, wp2, q, vmem_limit):
    """xp_flat:[BT,Cin,P] bf16 -> features [BT,Cout,Q] bf16 (strided row grid)."""
    bt, cin, p = xp_flat.shape
    cout = w_t.shape[0]
    # TODO(synk): for very large H*W (real-resolution backbones) add row tiling
    # with a 4-D output block; at stand-in sizes one image per grid step fits.
    return pl.pallas_call(
        functools.partial(_backbone_kernel, wp2=wp2, q=q),
        out_shape=jax.ShapeDtypeStruct((bt, cout, q), jnp.bfloat16),
        grid=(bt,),
        in_specs=[
            pl.BlockSpec((1, cin, p), lambda b: (b, 0, 0)),     # frame, read once/b
            pl.BlockSpec((cout, 9 * cin), lambda b: (0, 0)),    # weights (resident)
            pl.BlockSpec((cout, 1), lambda b: (0, 0)),
        ],
        out_specs=pl.BlockSpec((1, cout, q), lambda b: (b, 0, 0)),
        compiler_params=pltpu.CompilerParams(
            dimension_semantics=("parallel",),
            vmem_limit_bytes=vmem_limit),
    )(xp_flat, w_t, b_col)


# ----------------------------------------------------------------------------
# fused audio-visual head kernel (stand-in) + temporal mask gating
# ----------------------------------------------------------------------------
def _head_kernel(mask_ref, bpred_ref, saw_ref,
                 img_ref, flow_ref, audio_ref, red_ref,
                 wflow_ref, bflow_ref,
                 pred_ref, maskf_ref, *, cf):
    """Per (batch, HW-tile) grid step, when flag != 0:
         x      = img*flag + Wf^T@flow + bf     (flow fusion: VPU FMAs, Cf small)
         red    = [audio; wpred] @ x            (ONE MXU dot -> scores & pred sum)
         attn   = sigmoid(red[0])
         fused  = x + audio * attn
         mask_feature = fused * flag
         pred   = (red[1] + attn*<audio,wpred> + bpred) * flag
       flag == 0 (temporal padding): skip all compute, store exact zeros.
    """
    b = pl.program_id(0)
    flag = mask_ref[b]                                  # SMEM scalar

    @pl.when(flag != 0.0)
    def _compute():
        x = img_ref[0].astype(jnp.float32) * flag       # (C, T)
        flo = flow_ref[0].astype(jnp.float32)           # (Cf, T)
        wf = wflow_ref[...]                             # (C, Cf)
        for c in range(cf):                             # VPU FMAs (Cf = 2)
            x = x + wf[:, c:c + 1] * flo[c:c + 1, :]
        x = x + bflow_ref[...]

        red = jnp.dot(red_ref[0], x, preferred_element_type=jnp.float32)  # (2, T)
        attn = jax.nn.sigmoid(red[0:1, :])              # (1, T)
        fused = x + audio_ref[0] * attn                 # (C, T)

        maskf_ref[0] = (fused * flag).astype(maskf_ref.dtype)
        pred = (red[1:2, :] + attn * saw_ref[b] + bpred_ref[0]) * flag
        pred_ref[0] = pred.astype(pred_ref.dtype)

    @pl.when(flag == 0.0)
    def _zero():
        maskf_ref[...] = jnp.zeros_like(maskf_ref)
        pred_ref[...] = jnp.zeros_like(pred_ref)


def head_pallas(img_feat, flow_cl, audio_col, red_mat,
                mask_flag, bpred, s_aw,
                wflow_t, bflow_col, hw_tile, vmem_limit):
    """img:[BT,C,HW]bf16 flow:[BT,Cf,HW]bf16 audio:[BT,C,1] red:[BT,2,C]
       -> pred:[BT,1,HW] f32, mask_feature:[BT,C,HW] bf16 (lane-dense tiles)."""
    bt, c, hw = img_feat.shape
    cf = flow_cl.shape[1]
    n_hw = hw // hw_tile
    smem = pl.BlockSpec(memory_space=pltpu.MemorySpace.SMEM)
    return pl.pallas_call(
        functools.partial(_head_kernel, cf=cf),
        out_shape=(
            jax.ShapeDtypeStruct((bt, 1, hw), jnp.float32),
            jax.ShapeDtypeStruct((bt, c, hw), jnp.bfloat16),
        ),
        grid=(bt, n_hw),
        in_specs=[
            smem,                                                     # mask [BT]
            smem,                                                     # bpred [1]
            smem,                                                     # <a,wpred> [BT]
            pl.BlockSpec((1, c, hw_tile), lambda b, t: (b, 0, t)),    # img
            pl.BlockSpec((1, cf, hw_tile), lambda b, t: (b, 0, t)),   # flow
            pl.BlockSpec((1, c, 1), lambda b, t: (b, 0, 0)),          # audio column
            pl.BlockSpec((1, 2, c), lambda b, t: (b, 0, 0)),          # [audio; wpred]
            pl.BlockSpec((c, cf), lambda b, t: (0, 0)),               # Wf^T
            pl.BlockSpec((c, 1), lambda b, t: (0, 0)),                # bf
        ],
        out_specs=(
            pl.BlockSpec((1, 1, hw_tile), lambda b, t: (b, 0, t)),
            pl.BlockSpec((1, c, hw_tile), lambda b, t: (b, 0, t)),
        ),
        compiler_params=pltpu.CompilerParams(
            dimension_semantics=("parallel", "parallel"),
            vmem_limit_bytes=vmem_limit),
    )(mask_flag, bpred, s_aw, img_feat, flow_cl, audio_col, red_mat,
      wflow_t, bflow_col)


# ----------------------------------------------------------------------------
# AVSegFormerUFE (synthetic, Pallas-backed)
# ----------------------------------------------------------------------------
class AVSegFormerUFE:
    def __init__(self, key, audio_dim=32, embed_dim=32, img_channels=3,
                 flow_channels=2, spectro_hw=(16, 16), T=2):
        self.audio_dim = audio_dim
        self.embed_dim = embed_dim
        self.flow_channels = flow_channels
        self.T = T
        ks = jax.random.split(key, 6)
        spec_feat = spectro_hw[0] * spectro_hw[1]
        s = 0.05
        # frozen VGGish stand-in: Linear(spec_feat -> audio_dim) + ReLU
        self.vggish_w = jax.random.normal(ks[0], (spec_feat, audio_dim), jnp.float32) * s
        self.vggish_b = jnp.zeros((audio_dim,), jnp.float32)
        # audio_proj: nn.Linear(audio_dim, embed_dim)
        self.aproj_w = jax.random.normal(ks[1], (audio_dim, embed_dim), jnp.float32) * s
        self.aproj_b = jax.random.normal(ks[2], (embed_dim,), jnp.float32) * s
        # backbone stand-in: 3x3 conv img_channels -> embed_dim, stored W^T (bf16).
        # TODO(synk): tap ordering is (dh, dw)-major then cin — real checkpoint
        # conv weights must be permuted into this layout.
        self.bb_wT = (jax.random.normal(ks[3], (embed_dim, 9 * img_channels),
                                        jnp.float32) * s).astype(jnp.bfloat16)
        self.bb_b = jnp.zeros((embed_dim, 1), jnp.float32)
        # head stand-in params (channel-first layouts)
        self.head_wflowT = jax.random.normal(ks[4], (embed_dim, flow_channels),
                                             jnp.float32) * s
        self.head_bflow = jnp.zeros((embed_dim, 1), jnp.float32)
        self.head_wpred = jax.random.normal(ks[5], (embed_dim,), jnp.float32) * s
        self.head_bpred = jnp.zeros((1,), jnp.float32)
        self.neck = None  # TODO(synk): neck config not available

    def extract_audio_feat(self, audio):
        # frozen VGGish stand-in + audio_proj: two tiny GEMMs, left to plain XLA
        # (a Pallas launch here is pure overhead at BT~2, N<=embed_dim).
        bt = audio.shape[0]
        flat = audio.reshape(bt, -1)
        h = jax.nn.relu(flat @ self.vggish_w + self.vggish_b)
        return h @ self.aproj_w + self.aproj_b                       # [BT, C]

    def extract_feat(self, frames, vmem_limit):
        """Backbone stand-in: im2col-free 3x3 conv in Pallas, bf16 streaming."""
        bt, cin, h, w = frames.shape
        wp2, q = w + 2, h * (w + 2)
        # pad top/left by 1, right by 1, bottom by 2: the extra bottom row keeps
        # the flattened tap slices in range for the (cropped) junk columns.
        xp = jnp.pad(frames, ((0, 0), (0, 0), (1, 2), (1, 1))).astype(jnp.bfloat16)
        xp_flat = xp.reshape(bt, cin, (h + 3) * wp2)
        feat_s = backbone_pallas(xp_flat, self.bb_wT, self.bb_b, wp2, q, vmem_limit)
        # crop the 2 junk columns per row; TODO(synk): fold this crop into the
        # backbone store (4-D out block) when row tiling is added for large HW.
        feats = feat_s.reshape(bt, self.embed_dim, h, wp2)[:, :, :, :w]
        feats = feats.reshape(bt, self.embed_dim, h * w)
        if self.neck is not None:
            feats = self.neck(feats)
        return feats

    def forward(self, audio, frames, flow, vid_temporal_mask_flag=None):
        bt, _, h, w = frames.shape
        hw = h * w
        c = self.embed_dim
        vmem_limit = _vmem_limit_bytes()

        if vid_temporal_mask_flag is None:
            mask_flag = jnp.ones((bt,), jnp.float32)
        else:
            mask_flag = vid_temporal_mask_flag.reshape(bt).astype(jnp.float32)

        # 1) audio path (frozen vggish + unsqueeze(1) + audio_proj), plain XLA
        audio_emb = self.extract_audio_feat(audio)                   # [BT, C]
        audio_col = audio_emb[:, :, None]                            # [BT, C, 1]
        # stacked reduction matrix [audio; wpred] and <audio, wpred>: lets the
        # head do both channel reductions in a single MXU dot.
        wpred_row = jnp.broadcast_to(self.head_wpred[None, :], (bt, c))
        red_mat = jnp.stack([audio_emb, wpred_row], axis=1)          # [BT, 2, C]
        s_aw = audio_emb @ self.head_wpred                           # [BT]

        # 2) visual features, channel-first [BT, C, HW], bf16
        img_feat = self.extract_feat(frames, vmem_limit)

        # 3) lane-dense fused head: pad HW to a multiple of 128, VMEM-aware tile
        flow_cl = flow.reshape(bt, self.flow_channels, hw).astype(jnp.bfloat16)
        hw_pad = ((hw + 127) // 128) * 128
        if hw_pad != hw:
            pad = ((0, 0), (0, 0), (0, hw_pad - hw))
            img_feat = jnp.pad(img_feat, pad)
            flow_cl = jnp.pad(flow_cl, pad)
        per_lane_bytes = 2 * c * 2 + self.flow_channels * 2 + 4      # img+maskf+flow+pred
        hw_tile = _pick_lane_tile(hw_pad, per_lane_bytes, vmem_limit // 4)

        pred_cl, maskf_cl = head_pallas(
            img_feat, flow_cl, audio_col, red_mat,
            mask_flag, self.head_bpred, s_aw,
            self.head_wflowT, self.head_bflow, hw_tile, vmem_limit)

        if hw_pad != hw:
            pred_cl = pred_cl[:, :, :hw]
            maskf_cl = maskf_cl[:, :, :hw]
        # channel-first tokens map back to NCHW with pure reshapes
        pred = pred_cl.reshape(bt, 1, h, w)
        mask_feature = maskf_cl.reshape(bt, c, h, w)
        return pred, mask_feature


# ----------------------------------------------------------------------------
# main
# ----------------------------------------------------------------------------
if __name__ == "__main__":
    key = jax.random.PRNGKey(0)
    k_model, k_a, k_f, k_fl = jax.random.split(key, 4)

    B, T = 1, 2
    BT = B * T
    H = W = 16

    model = AVSegFormerUFE(k_model, audio_dim=32, embed_dim=32,
                           img_channels=3, flow_channels=2,
                           spectro_hw=(16, 16), T=T)

    audio = jax.random.normal(k_a, (BT, 1, 16, 16), jnp.float32)     # spectrograms
    frames = jax.random.normal(k_f, (BT, 3, H, W), jnp.float32)      # NCHW frames
    flow = jax.random.normal(k_fl, (BT, 2, H, W), jnp.float32)       # NCHW flow
    vid_temporal_mask_flag = jnp.array([1.0, 0.0], jnp.float32)      # [BT]

    fwd = jax.jit(model.forward)
    pred, mask_feature = fwd(audio, frames, flow, vid_temporal_mask_flag)
    jax.block_until_ready((pred, mask_feature))

    assert pred.shape == (BT, 1, H, W)
    assert mask_feature.shape == (BT, 32, H, W)
    # masked (flag == 0) batch element must be exactly zero (pl.when zero branch)
    assert float(jnp.abs(pred[1]).max()) == 0.0
    assert float(jnp.abs(mask_feature[1]).max()) == 0.0
    assert bool(jnp.all(jnp.isfinite(pred)))
    assert bool(jnp.all(jnp.isfinite(mask_feature)))

    print("KERNEL_OK")
</pallas_src>

<mosaic_0001>
module attributes {stable_mosaic.version = 11 : i64} {
  func.func @_backbone_kernel(%arg0: i32, %arg1: memref<1x3x342xbf16, #tpu.memory_space<vmem>>, %arg2: memref<32x27xbf16, #tpu.memory_space<vmem>>, %arg3: memref<32x1xf32, #tpu.memory_space<vmem>>, %arg4: memref<1x32x288xbf16, #tpu.memory_space<vmem>>) attributes {dimension_semantics = [#tpu.dimension_semantics<parallel>], iteration_bounds = array<i64: 2>, scalar_prefetch = 0 : i64, scratch_operands = 0 : i64, tpu.core_type = #tpu.core_type<tc>, window_params = [{transform_indices = @transform_0, window_bounds = array<i64: 1, 3, 342>}, {pipeline_mode = #tpu.pipeline_mode<synchronous>, transform_indices = @transform_1, window_bounds = array<i64: 32, 27>}, {pipeline_mode = #tpu.pipeline_mode<synchronous>, transform_indices = @transform_2, window_bounds = array<i64: 32, 1>}, {transform_indices = @transform_3, window_bounds = array<i64: 1, 32, 288>}]} {
    %c0 = arith.constant 0 : index
    %c0_0 = arith.constant 0 : index
    %c0_1 = arith.constant 0 : index
    %0 = vector.load %arg1[%c0, %c0_0, %c0_1] : memref<1x3x342xbf16, #tpu.memory_space<vmem>>, vector<1x3x342xbf16>
    %1 = vector.shape_cast %0 : vector<1x3x342xbf16> to vector<3x342xbf16>
    %2 = arith.extf %1 : vector<3x342xbf16> to vector<3x342xf32>
    %3 = vector.extract_strided_slice %2 {offsets = [0, 0], sizes = [3, 288], strides = [1, 1]} : vector<3x342xf32> to vector<3x288xf32>
    %4 = vector.extract_strided_slice %2 {offsets = [0, 1], sizes = [3, 288], strides = [1, 1]} : vector<3x342xf32> to vector<3x288xf32>
    %5 = vector.extract_strided_slice %2 {offsets = [0, 2], sizes = [3, 288], strides = [1, 1]} : vector<3x342xf32> to vector<3x288xf32>
    %6 = vector.extract_strided_slice %2 {offsets = [0, 18], sizes = [3, 288], strides = [1, 1]} : vector<3x342xf32> to vector<3x288xf32>
    %7 = vector.extract_strided_slice %2 {offsets = [0, 19], sizes = [3, 288], strides = [1, 1]} : vector<3x342xf32> to vector<3x288xf32>
    %8 = vector.extract_strided_slice %2 {offsets = [0, 20], sizes = [3, 288], strides = [1, 1]} : vector<3x342xf32> to vector<3x288xf32>
    %9 = vector.extract_strided_slice %2 {offsets = [0, 36], sizes = [3, 288], strides = [1, 1]} : vector<3x342xf32> to vector<3x288xf32>
    %10 = vector.extract_strided_slice %2 {offsets = [0, 37], sizes = [3, 288], strides = [1, 1]} : vector<3x342xf32> to vector<3x288xf32>
    %11 = vector.extract_strided_slice %2 {offsets = [0, 38], sizes = [3, 288], strides = [1, 1]} : vector<3x342xf32> to vector<3x288xf32>
    %12 = tpu.concatenate %3, %4, %5, %6, %7, %8, %9, %10, %11 in 0 : vector<3x288xf32>, vector<3x288xf32>, vector<3x288xf32>, vector<3x288xf32>, vector<3x288xf32>, vector<3x288xf32>, vector<3x288xf32>, vector<3x288xf32>, vector<3x288xf32> -> vector<27x288xf32>
    %13 = arith.truncf %12 : vector<27x288xf32> to vector<27x288xbf16>
    %c0_2 = arith.constant 0 : index
    %c0_3 = arith.constant 0 : index
    %14 = vector.load %arg2[%c0_2, %c0_3] : memref<32x27xbf16, #tpu.memory_space<vmem>>, vector<32x27xbf16>
    %cst = arith.constant dense<0.000000e+00> : vector<32x288xf32>
    %15 = tpu.matmul %14, %13, %cst {dimension_numbers = #tpu.dot_dimension_numbers<[1], [0], [0], [1], [0, 0, 1, 1], [], []>} : vector<32x27xbf16>, vector<27x288xbf16>, vector<32x288xf32> -> vector<32x288xf32>
    %c0_4 = arith.constant 0 : index
    %c0_5 = arith.constant 0 : index
    %16 = vector.load %arg3[%c0_4, %c0_5] : memref<32x1xf32, #tpu.memory_space<vmem>>, vector<32x1xf32>
    %17 = vector.broadcast %16 : vector<32x1xf32> to vector<32x288xf32>
    %18 = arith.addf %15, %17 : vector<32x288xf32>
    %cst_6 = arith.constant 0.000000e+00 : f32
    %19 = vector.broadcast %cst_6 : f32 to vector<32x288xf32>
    %20 = arith.maximumf %18, %19 : vector<32x288xf32>
    %21 = arith.truncf %20 : vector<32x288xf32> to vector<32x288xbf16>
    %c0_7 = arith.constant 0 : index
    %c0_8 = arith.constant 0 : index
    %c0_9 = arith.constant 0 : index
    %22 = vector.load %arg4[%c0_7, %c0_8, %c0_9] : memref<1x32x288xbf16, #tpu.memory_space<vmem>>, vector<1x32x288xbf16>
    %23 = vector.shape_cast %22 : vector<1x32x288xbf16> to vector<32x288xbf16>
    %24 = vector.shape_cast %21 : vector<32x288xbf16> to vector<1x32x288xbf16>
    tpu.vector_store %arg4[%c0_7, %c0_8, %c0_9], %24 {strides = array<i32>} : memref<1x32x288xbf16, #tpu.memory_space<vmem>>, vector<1x32x288xbf16>,
    return
  }
  func.func @transform_0(%arg0: i32) -> (i32, i32, i32) {
    %c0_i32 = arith.constant 0 : i32
    %c0_i32_0 = arith.constant 0 : i32
    %c0_i32_1 = arith.constant 0 : i32
    return %arg0, %c0_i32, %c0_i32_0 : i32, i32, i32
  }
  func.func @transform_1(%arg0: i32) -> (i32, i32) {
    %c0_i32 = arith.constant 0 : i32
    %c0_i32_0 = arith.constant 0 : i32
    %c0_i32_1 = arith.constant 0 : i32
    return %c0_i32, %c0_i32_0 : i32, i32
  }
  func.func @transform_2(%arg0: i32) -> (i32, i32) {
    %c0_i32 = arith.constant 0 : i32
    %c0_i32_0 = arith.constant 0 : i32
    %c0_i32_1 = arith.constant 0 : i32
    return %c0_i32, %c0_i32_0 : i32, i32
  }
  func.func @transform_3(%arg0: i32) -> (i32, i32, i32) {
    %c0_i32 = arith.constant 0 : i32
    %c0_i32_0 = arith.constant 0 : i32
    %c0_i32_1 = arith.constant 0 : i32
    return %arg0, %c0_i32, %c0_i32_0 : i32, i32, i32
  }
}

module attributes {stable_mosaic.version = 11 : i64} {
  func.func @_head_kernel(%arg0: i32, %arg1: i32, %arg2: memref<2xf32, #tpu.memory_space<smem>>, %arg3: memref<1xf32, #tpu.memory_space<smem>>, %arg4: memref<2xf32, #tpu.memory_space<smem>>, %arg5: memref<1x32x256xbf16, #tpu.memory_space<vmem>>, %arg6: memref<1x2x256xbf16, #tpu.memory_space<vmem>>, %arg7: memref<1x32x1xf32, #tpu.memory_space<vmem>>, %arg8: memref<1x2x32xf32, #tpu.memory_space<vmem>>, %arg9: memref<32x2xf32, #tpu.memory_space<vmem>>, %arg10: memref<32x1xf32, #tpu.memory_space<vmem>>, %arg11: memref<1x1x256xf32, #tpu.memory_space<vmem>>, %arg12: memref<1x32x256xbf16, #tpu.memory_space<vmem>>) attributes {dimension_semantics = [#tpu.dimension_semantics<parallel>, #tpu.dimension_semantics<parallel>], iteration_bounds = array<i64: 2, 1>, scalar_prefetch = 0 : i64, scratch_operands = 0 : i64, tpu.core_type = #tpu.core_type<tc>, window_params = [{transform_indices = @transform_0, window_bounds = array<i64: 2>}, {transform_indices = @transform_1, window_bounds = array<i64: 1>}, {transform_indices = @transform_2, window_bounds = array<i64: 2>}, {transform_indices = @transform_3, window_bounds = array<i64: 1, 32, 256>}, {transform_indices = @transform_4, window_bounds = array<i64: 1, 2, 256>}, {transform_indices = @transform_5, window_bounds = array<i64: 1, 32, 1>}, {transform_indices = @transform_6, window_bounds = array<i64: 1, 2, 32>}, {pipeline_mode = #tpu.pipeline_mode<synchronous>, transform_indices = @transform_7, window_bounds = array<i64: 32, 2>}, {pipeline_mode = #tpu.pipeline_mode<synchronous>, transform_indices = @transform_8, window_bounds = array<i64: 32, 1>}, {transform_indices = @transform_9, window_bounds = array<i64: 1, 1, 256>}, {transform_indices = @transform_10, window_bounds = array<i64: 1, 32, 256>}]} {
    %0 = arith.index_cast %arg0 : i32 to index
    %1 = memref.load %arg2[%0] : memref<2xf32, #tpu.memory_space<smem>>
    %cst = arith.constant 0.000000e+00 : f32
    %2 = arith.cmpf one, %1, %cst : f32
    %3 = arith.extui %2 : i1 to i32
    %c0_i32 = arith.constant 0 : i32
    %4 = arith.cmpi ne, %3, %c0_i32 : i32
    scf.if %4 {
      %c0 = arith.constant 0 : index
      %c0_2 = arith.constant 0 : index
      %c0_3 = arith.constant 0 : index
      %8 = vector.load %arg5[%c0, %c0_2, %c0_3] : memref<1x32x256xbf16, #tpu.memory_space<vmem>>, vector<1x32x256xbf16>
      %9 = vector.shape_cast %8 : vector<1x32x256xbf16> to vector<32x256xbf16>
      %10 = arith.extf %9 : vector<32x256xbf16> to vector<32x256xf32>
      %11 = vector.broadcast %1 : f32 to vector<32x256xf32>
      %12 = arith.mulf %10, %11 : vector<32x256xf32>
      %c0_4 = arith.constant 0 : index
      %c0_5 = arith.constant 0 : index
      %c0_6 = arith.constant 0 : index
      %13 = vector.load %arg6[%c0_4, %c0_5, %c0_6] : memref<1x2x256xbf16, #tpu.memory_space<vmem>>, vector<1x2x256xbf16>
      %14 = vector.shape_cast %13 : vector<1x2x256xbf16> to vector<2x256xbf16>
      %15 = arith.extf %14 : vector<2x256xbf16> to vector<2x256xf32>
      %c0_7 = arith.constant 0 : index
      %c0_8 = arith.constant 0 : index
      %16 = vector.load %arg9[%c0_7, %c0_8] : memref<32x2xf32, #tpu.memory_space<vmem>>, vector<32x2xf32>
      %17 = vector.extract_strided_slice %16 {offsets = [0, 0], sizes = [32, 1], strides = [1, 1]} : vector<32x2xf32> to vector<32x1xf32>
      %18 = vector.extract_strided_slice %15 {offsets = [0, 0], sizes = [1, 256], strides = [1, 1]} : vector<2x256xf32> to vector<1x256xf32>
      %19 = vector.broadcast %17 : vector<32x1xf32> to vector<32x256xf32>
      %20 = vector.broadcast %18 : vector<1x256xf32> to vector<32x256xf32>
      %21 = arith.mulf %19, %20 : vector<32x256xf32>
      %22 = arith.addf %12, %21 : vector<32x256xf32>
      %23 = vector.extract_strided_slice %16 {offsets = [0, 1], sizes = [32, 1], strides = [1, 1]} : vector<32x2xf32> to vector<32x1xf32>
      %24 = vector.extract_strided_slice %15 {offsets = [1, 0], sizes = [1, 256], strides = [1, 1]} : vector<2x256xf32> to vector<1x256xf32>
      %25 = vector.broadcast %23 : vector<32x1xf32> to vector<32x256xf32>
      %26 = vector.broadcast %24 : vector<1x256xf32> to vector<32x256xf32>
      %27 = arith.mulf %25, %26 : vector<32x256xf32>
      %28 = arith.addf %22, %27 : vector<32x256xf32>
      %c0_9 = arith.constant 0 : index
      %c0_10 = arith.constant 0 : index
      %29 = vector.load %arg10[%c0_9, %c0_10] : memref<32x1xf32, #tpu.memory_space<vmem>>, vector<32x1xf32>
      %30 = vector.broadcast %29 : vector<32x1xf32> to vector<32x256xf32>
      %31 = arith.addf %28, %30 : vector<32x256xf32>
      %c0_11 = arith.constant 0 : index
      %c0_12 = arith.constant 0 : index
      %c0_13 = arith.constant 0 : index
      %32 = vector.load %arg8[%c0_11, %c0_12, %c0_13] : memref<1x2x32xf32, #tpu.memory_space<vmem>>, vector<1x2x32xf32>
      %33 = vector.shape_cast %32 : vector<1x2x32xf32> to vector<2x32xf32>
      %cst_14 = arith.constant dense<0.000000e+00> : vector<2x256xf32>
      %34 = tpu.matmul %33, %31, %cst_14 {dimension_numbers = #tpu.dot_dimension_numbers<[1], [0], [0], [1], [0, 0, 1, 1], [], []>} : vector<2x32xf32>, vector<32x256xf32>, vector<2x256xf32> -> vector<2x256xf32>
      %35 = vector.extract_strided_slice %34 {offsets = [0, 0], sizes = [1, 256], strides = [1, 1]} : vector<2x256xf32> to vector<1x256xf32>
      %36 = arith.negf %35 : vector<1x256xf32>
      %37 = math.exp %36 : vector<1x256xf32>
      %cst_15 = arith.constant 1.000000e+00 : f32
      %38 = vector.broadcast %cst_15 : f32 to vector<1x256xf32>
      %39 = arith.addf %38, %37 : vector<1x256xf32>
      %40 = arith.divf %38, %39 : vector<1x256xf32>
      %c0_16 = arith.constant 0 : index
      %c0_17 = arith.constant 0 : index
      %c0_18 = arith.constant 0 : index
      %41 = vector.load %arg7[%c0_16, %c0_17, %c0_18] : memref<1x32x1xf32, #tpu.memory_space<vmem>>, vector<1x32x1xf32>
      %42 = vector.shape_cast %41 : vector<1x32x1xf32> to vector<32x1xf32>
      %43 = vector.broadcast %42 : vector<32x1xf32> to vector<32x256xf32>
      %44 = vector.broadcast %40 : vector<1x256xf32> to vector<32x256xf32>
      %45 = arith.mulf %43, %44 : vector<32x256xf32>
      %46 = arith.addf %31, %45 : vector<32x256xf32>
      %47 = vector.broadcast %1 : f32 to vector<32x256xf32>
      %48 = arith.mulf %46, %47 : vector<32x256xf32>
      %49 = arith.truncf %48 : vector<32x256xf32> to vector<32x256xbf16>
      %c0_19 = arith.constant 0 : index
      %c0_20 = arith.constant 0 : index
      %c0_21 = arith.constant 0 : index
      %50 = vector.load %arg12[%c0_19, %c0_20, %c0_21] : memref<1x32x256xbf16, #tpu.memory_space<vmem>>, vector<1x32x256xbf16>
      %51 = vector.shape_cast %50 : vector<1x32x256xbf16> to vector<32x256xbf16>
      %52 = vector.shape_cast %49 : vector<32x256xbf16> to vector<1x32x256xbf16>
      tpu.vector_store %arg12[%c0_19, %c0_20, %c0_21], %52 {strides = array<i32>} : memref<1x32x256xbf16, #tpu.memory_space<vmem>>, vector<1x32x256xbf16>,
      %53 = vector.extract_strided_slice %34 {offsets = [1, 0], sizes = [1, 256], strides = [1, 1]} : vector<2x256xf32> to vector<1x256xf32>
      %54 = arith.index_cast %arg0 : i32 to index
      %55 = memref.load %arg4[%54] : memref<2xf32, #tpu.memory_space<smem>>
      %56 = vector.broadcast %55 : f32 to vector<1x256xf32>
      %57 = arith.mulf %40, %56 : vector<1x256xf32>
      %58 = arith.addf %53, %57 : vector<1x256xf32>
      %c0_22 = arith.constant 0 : index
      %59 = memref.load %arg3[%c0_22] : memref<1xf32, #tpu.memory_space<smem>>
      %60 = vector.broadcast %59 : f32 to vector<1x256xf32>
      %61 = arith.addf %58, %60 : vector<1x256xf32>
      %62 = vector.broadcast %1 : f32 to vector<1x256xf32>
      %63 = arith.mulf %61, %62 : vector<1x256xf32>
      %c0_23 = arith.constant 0 : index
      %c0_24 = arith.constant 0 : index
      %c0_25 = arith.constant 0 : index
      %64 = vector.load %arg11[%c0_23, %c0_24, %c0_25] : memref<1x1x256xf32, #tpu.memory_space<vmem>>, vector<1x1x256xf32>
      %65 = vector.shape_cast %64 : vector<1x1x256xf32> to vector<1x256xf32>
      %66 = vector.shape_cast %63 : vector<1x256xf32> to vector<1x1x256xf32>
      tpu.vector_store %arg11[%c0_23, %c0_24, %c0_25], %66 {strides = array<i32>} : memref<1x1x256xf32, #tpu.memory_space<vmem>>, vector<1x1x256xf32>,
    } else {
    }
    %cst_0 = arith.constant 0.000000e+00 : f32
    %5 = arith.cmpf oeq, %1, %cst_0 : f32
    %6 = arith.extui %5 : i1 to i32
    %c0_i32_1 = arith.constant 0 : i32
    %7 = arith.cmpi ne, %6, %c0_i32_1 : i32
    scf.if %7 {
      %cst_2 = arith.constant 0.000000e+00 : bf16
      %8 = vector.broadcast %cst_2 : bf16 to vector<1x32x256xbf16>
      %c0 = arith.constant 0 : index
      %c0_3 = arith.constant 0 : index
      %c0_4 = arith.constant 0 : index
      %9 = vector.load %arg12[%c0, %c0_3, %c0_4] : memref<1x32x256xbf16, #tpu.memory_space<vmem>>, vector<1x32x256xbf16>
      tpu.vector_store %arg12[%c0, %c0_3, %c0_4], %8 {strides = array<i32>} : memref<1x32x256xbf16, #tpu.memory_space<vmem>>, vector<1x32x256xbf16>,
      %cst_5 = arith.constant 0.000000e+00 : f32
      %10 = vector.broadcast %cst_5 : f32 to vector<1x1x256xf32>
      %c0_6 = arith.constant 0 : index
      %c0_7 = arith.constant 0 : index
      %c0_8 = arith.constant 0 : index
      %11 = vector.load %arg11[%c0_6, %c0_7, %c0_8] : memref<1x1x256xf32, #tpu.memory_space<vmem>>, vector<1x1x256xf32>
      tpu.vector_store %arg11[%c0_6, %c0_7, %c0_8], %10 {strides = array<i32>} : memref<1x1x256xf32, #tpu.memory_space<vmem>>, vector<1x1x256xf32>,
    } else {
    }
    return
  }
  func.func @transform_0(%arg0: i32, %arg1: i32) -> i32 {
    %c0_i32 = arith.constant 0 : i32
    %c0_i32_0 = arith.constant 0 : i32
    return %c0_i32 : i32
  }
  func.func @transform_1(%arg0: i32, %arg1: i32) -> i32 {
    %c0_i32 = arith.constant 0 : i32
    %c0_i32_0 = arith.constant 0 : i32
    return %c0_i32 : i32
  }
  func.func @transform_2(%arg0: i32, %arg1: i32) -> i32 {
    %c0_i32 = arith.constant 0 : i32
    %c0_i32_0 = arith.constant 0 : i32
    return %c0_i32 : i32
  }
  func.func @transform_3(%arg0: i32, %arg1: i32) -> (i32, i32, i32) {
    %c0_i32 = arith.constant 0 : i32
    %c0_i32_0 = arith.constant 0 : i32
    return %arg0, %c0_i32, %arg1 : i32, i32, i32
  }
  func.func @transform_4(%arg0: i32, %arg1: i32) -> (i32, i32, i32) {
    %c0_i32 = arith.constant 0 : i32
    %c0_i32_0 = arith.constant 0 : i32
    return %arg0, %c0_i32, %arg1 : i32, i32, i32
  }
  func.func @transform_5(%arg0: i32, %arg1: i32) -> (i32, i32, i32) {
    %c0_i32 = arith.constant 0 : i32
    %c0_i32_0 = arith.constant 0 : i32
    %c0_i32_1 = arith.constant 0 : i32
    return %arg0, %c0_i32, %c0_i32_0 : i32, i32, i32
  }
  func.func @transform_6(%arg0: i32, %arg1: i32) -> (i32, i32, i32) {
    %c0_i32 = arith.constant 0 : i32
    %c0_i32_0 = arith.constant 0 : i32
    %c0_i32_1 = arith.constant 0 : i32
    return %arg0, %c0_i32, %c0_i32_0 : i32, i32, i32
  }
  func.func @transform_7(%arg0: i32, %arg1: i32) -> (i32, i32) {
    %c0_i32 = arith.constant 0 : i32
    %c0_i32_0 = arith.constant 0 : i32
    %c0_i32_1 = arith.constant 0 : i32
    return %c0_i32, %c0_i32_0 : i32, i32
  }
  func.func @transform_8(%arg0: i32, %arg1: i32) -> (i32, i32) {
    %c0_i32 = arith.constant 0 : i32
    %c0_i32_0 = arith.constant 0 : i32
    %c0_i32_1 = arith.constant 0 : i32
    return %c0_i32, %c0_i32_0 : i32, i32
  }
  func.func @transform_9(%arg0: i32, %arg1: i32) -> (i32, i32, i32) {
    %c0_i32 = arith.constant 0 : i32
    %c0_i32_0 = arith.constant 0 : i32
    return %arg0, %c0_i32, %arg1 : i32, i32, i32
  }
  func.func @transform_10(%arg0: i32, %arg1: i32) -> (i32, i32, i32) {
    %c0_i32 = arith.constant 0 : i32
    %c0_i32_0 = arith.constant 0 : i32
    return %arg0, %c0_i32, %arg1 : i32, i32, i32
  }
}

</mosaic_0001>

<bundles_post_ra>
// kernel: forward.2
= control target key start
LH: loop header
LB: loop body
LE: loop exit
PB: predicated region body
PF: predicated region fallthrough
CT: control target
= control target key end

     0   :  { %s748_s12 = smov 0   ;;  %s870_s0 = inlined_call_operand.vmem [shape: bf16[2,3,342], index: 0, kind: input, shape index: {}]   ;;  %s871_s1 = inlined_call_operand.vmem [shape: bf16[32,27], index: 1, kind: input, shape index: {}]   ;;  %s872_s2 = inlined_call_operand.vmem [shape: f32[32,1], index: 2, kind: input, shape index: {}]   ;;  %s873_s3 = inlined_call_operand.vmem [shape: bf16[2,32,288], index: 3, kind: output, shape index: {}]  }
   0x1 LB: > { %s603_s13 = sadd.s32 4294967295, %s716_s12   ;;  %p607_p0 = scmp.ge.s32.totalorder %s716_s12, 1  ;;  %s716_s12 = sphi %s748_s12, %s13_s12  }
   0x2   : > { %p137_p1 = scmp.lt.s32.totalorder %s716_s12, 3 }
   0x4   : > { %p138_p2 = pnand %p607_p0, %p137_p1 }
   0x5   : > { %p161_p3 = scmp.lt.s32.totalorder (!%p138_p2), %s603_s13, 1  ;;  %s718_s18 = smov (!%p138_p2), 110   ;;  %v796_v31 = vld [vmem:[%s871_s1] sm:$0xff] (!%p138_p2)   ;;  %vm367_vm0 = vcmask (!%p138_p2), 220160   ;;  %v725_v33 = vmov (!%p138_p2), 0   ;;  %v334_v35 = vld [vmem:[%s872_s2 + $0x8] sm:$0xff] (!%p138_p2) }
   0x6   : > { %141 = sbr.rel (%p138_p2) target bundleno = 406 (0x196), region = 32  ;;  %s719_s19 = smov (!%p138_p2), 126   ;;  %417 = vmatprep.mubr.bf16.mxu0 (!%p138_p2), %v725_v33  ;;  %642 = vmatprep.mubr.msk.bf16.mxu1 (!%p138_p2), %vm367_vm0, %v796_v31  ;;  %v333_v34 = vld [vmem:[%s872_s2] sm:$0xff] (!%p138_p2)  ;;  %v336_v36 = vld [vmem:[%s872_s2 + $0x18] sm:$0xff] (!%p138_p2)  ;;  %v335_v37 = vld [vmem:[%s872_s2 + $0x10] sm:$0xff] (!%p138_p2)  ;;  %vm232_vm1 = vcmask (!%p138_p2), 891904  }
   0x7   : > { %s720_s20 = smov (!%p138_p2), 109   ;;  %s721_s21 = smov (!%p138_p2), 127   ;;  %706 = vset.pattern.permute.xlu0 (!%p138_p2), %v725_v33  ;;  %707 = vset.pattern.permute.xlu1 (!%p138_p2), %v725_v33  ;;  %vm218_vm2 = vcmask (!%p138_p2), 900096   ;;  %vm303_vm3 = vcmask (!%p138_p2), 1040384   ;;  %vm203_vm4 = vcmask (!%p138_p2), 1031168   ;;  %vm188_vm5 = vcmask (!%p138_p2), 1039360  }
   0x8   : > { %s722_s22 = smov (!%p138_p2), 108   ;;  %s723_s23 = smov (!%p138_p2), 92   ;;  %vm247_vm6 = vcmask (!%p138_p2), 883712   ;;  %vm295_vm7 = vcmask (!%p138_p2), 1042432   ;;  %vm299_vm8 = vcmask (!%p138_p2), 1045504   ;;  %vm307_vm9 = vcmask (!%p138_p2), 1043456  }
   0x9   : > { %s724_s26 = smov (!%p138_p2), 91   ;;  %s726_s27 = smov (!%p138_p2), 90   ;;  %vm311_vm10 = vcmask (!%p138_p2), 1046528   ;;  %vm262_vm11 = vcmask (!%p138_p2), 752640   ;;  %vm277_vm12 = vcmask (!%p138_p2), 744448   ;;  %vm315_vm13 = vcmask (!%p138_p2), 1041408  }
   0xa   : > { %vm319_vm14 = vcmask (!%p138_p2), 1044480   ;;  %vm289_vm15 = vcmask (!%p138_p2), 736256  }
   0xd   : > { %s875_s13 = smov (!%p161_p3, %s603_s13), 1 }
   0xe   : > { %s646_s14 = smul.u32 6, %s875_s13 }
   0xf   : > { %s647_s11 = smul.u32 48, %s875_s13 }
  0x10   : > { %s165_s17 = scalar_lea.vmem %s870_s0, %s646_s14 }
  0x11   : > { %v172_v0 = vld [vmem:[%s165_s17] sm:$0x3f]  ;;  %s170_s15 = scalar_lea.vmem %s873_s3, %s647_s11 }
  0x12   : > { %v762_v1 = vunpack.c.l.bf16 %v172_v0  ;;  %v764_v2 = vunpack.c.h.bf16 %v172_v0 }
  0x14   : > { %v209_v3 = vrot.slane %v762_v1, 7  ;;  %v194_v4 = vrot.slane %v762_v1, 2  ;;  %v225_v5 = vcombine.low %v764_v2, %v764_v2  ;;  %v772_v6 = vcombine.high %v762_v1, %v762_v1 }
  0x15   : > { %v179_v8 = vrot.slane %v762_v1, 5  ;;  %v196_v9 = vrot.slane %v764_v2, 2  ;;  %v224_v11 = vcombine.low %v762_v1, %v762_v1  ;;  %v211_v12 = vrot.slane %v764_v2, 7 }
  0x16   : > { %212 = vrot.lane.b32.xlu0 %v209_v3, %s718_s18  ;;  %197 = vrot.lane.b32.xlu1 %v194_v4, %s719_s19  ;;  %v666_v7 = vpack.i.bf16 %v225_v5, %v762_v1  ;;  %v195_v10 = vrot.slane %v772_v6, 2  ;;  %v210_v14 = vrot.slane %v772_v6, 7  ;;  %v180_v15 = vrot.slane %v772_v6, 5 }
  0x17   : > { %v181_v16 = vrot.slane %v764_v2, 5  ;;  %v239_v19 = vrot.slane %v772_v6, 1  ;;  %v240_v20 = vrot.slane %v764_v2, 1  ;;  %v238_v22 = vrot.slane %v762_v1, 1 }
  0x18   : > { %v671_v13 = vpack.i.bf16 %v196_v9, %v195_v10  ;;  %v676_v17 = vpack.i.bf16 %v211_v12, %v210_v14  ;;  %v254_v23 = vrot.slane %v772_v6, 6  ;;  %v255_v24 = vrot.slane %v764_v2, 6 }
  0x19   : > { %v681_v18 = vpack.i.bf16 %v181_v16, %v180_v15  ;;  %v686_v21 = vpack.i.bf16 %v240_v20, %v239_v19  ;;  %v253_v26 = vrot.slane %v762_v1, 6  ;;  %v269_v27 = vrot.slane %v772_v6, 3 }
  0x1a   : > { %667 = vrot.lane.b32.xlu1 %v666_v7, %s720_s20  ;;  %182 = vrot.lane.b32.xlu0 %v179_v8, %s721_s21  ;;  %v691_v25 = vpack.i.bf16 %v255_v24, %v254_v23  ;;  %v270_v28 = vrot.slane %v764_v2, 3  ;;  %v268_v30 = vrot.slane %v762_v1, 3  ;;  %v701_v32 = vpack.i.bf16 %v764_v2, %v772_v6 }
  0x1c   : > { %v696_v29 = vpack.i.bf16 %v270_v28, %v269_v27 }
  0x1e   : > { %226 = vrot.lane.b32.xlu1 %v224_v11, %s720_s20  ;;  %672 = vrot.lane.b32.xlu0 %v671_v13, %s719_s19 }
  0x22   : > { %677 = vrot.lane.b32.xlu0 %v676_v17, %s718_s18  ;;  %682 = vrot.lane.b32.xlu1 %v681_v18, %s721_s21 }
  0x26   : > { %687 = vrot.lane.b32.xlu0 %v686_v21, %s722_s22  ;;  %241 = vrot.lane.b32.xlu1 %v238_v22, %s722_s22 }
  0x2a   : > { %692 = vrot.lane.b32.xlu0 %v691_v25, %s723_s23  ;;  %256 = vrot.lane.b32.xlu1 %v253_v26, %s723_s23 }
  0x2e   : > { %697 = vrot.lane.b32.xlu0 %v696_v29, %s724_s26  ;;  %271 = vrot.lane.b32.xlu1 %v268_v30, %s724_s26 }
  0x32   : > { %702 = vrot.lane.b32.xlu0 %v701_v32, %s726_s27  ;;  %283 = vrot.lane.b32.xlu1 %v762_v1, %s726_s27 }
  0x36   : > { %339 = vperm.xlu0 %706, %v333_v34   ;;  %344 = vperm.xlu1 %707, %v334_v35   ;;  %v727_v35 = vmov 65535  }
  0x3a   : > { %354 = vperm.xlu0 %706, %v336_v36   ;;  %349 = vperm.xlu1 %707, %v335_v37   ;;  %v374_v36 = vsel %vm319_vm14, 4294967295, %v727_v35 }
  0x88   : > { %v213_v38 = vpop.permute.xlu0 %212  ;;  %v198_v39 = vpop.permute.xlu1 %197 }
  0x8c   : > { %v668_v40 = vpop.permute.xlu1 %667  ;;  %v183_v41 = vpop.permute.xlu0 %182 }
  0x8d   : > { %v670_v44 = vunpack.i.h.bf16 %v668_v40  ;;  %v669_v45 = vunpack.i.l.bf16 %v668_v40 }
  0x8f   : > { %v234_v55 = vsel %vm232_vm1, %v669_v45, %v670_v44 }
  0x90   : > { %v227_v42 = vpop.permute.xlu1 %226  ;;  %v673_v43 = vpop.permute.xlu0 %672 }
  0x91   : > { %v675_v46 = vunpack.i.h.bf16 %v673_v43  ;;  %v674_v47 = vunpack.i.l.bf16 %v673_v43  ;;  %v233_v60 = vsel %vm232_vm1, %v227_v42, %v669_v45  ;;  %vm540_vm1 = vcmask 257024  }
  0x93   : > { %v205_v54 = vsel %vm203_vm4, %v674_v47, %v675_v46  ;;  %v204_v8 = vsel %vm203_vm4, %v198_v39, %v674_v47  ;;  %v375_v47 = vsel %vm299_vm8, %v374_v36, 0 }
  0x94   : > { %v678_v48 = vpop.permute.xlu0 %677  ;;  %v683_v49 = vpop.permute.xlu1 %682 }
  0x95   : > { %v680_v50 = vunpack.i.h.bf16 %v678_v48  ;;  %v679_v51 = vunpack.i.l.bf16 %v678_v48  ;;  %v685_v52 = vunpack.i.h.bf16 %v683_v49  ;;  %v684_v53 = vunpack.i.l.bf16 %v683_v49 }
  0x97   : > { %v219_v56 = vsel %vm218_vm2, %v213_v38, %v679_v51  ;;  %v220_v57 = vsel %vm218_vm2, %v679_v51, %v680_v50  ;;  %v306_v58 = vsel %vm303_vm3, %v675_v46, %v680_v50  ;;  %v189_v59 = vsel %vm188_vm5, %v183_v41, %v684_v53 }
  0x98   : > { %v688_v61 = vpop.permute.xlu0 %687  ;;  %v242_v62 = vpop.permute.xlu1 %241  ;;  %v298_v63 = vsel %vm295_vm7, %v764_v2, %v685_v52  ;;  %v190_v0 = vsel %vm188_vm5, %v684_v53, %v685_v52  ;;  %v305_v3 = vsel %vm303_vm3, %v205_v54, %v220_v57  ;;  %v310_v10 = vsel %vm307_vm9, %v306_v58, %v670_v44  ;;  %v709_v57 = vld [vmem:[%s871_s1 + $0x8] sm:$0xff]  }
  0x99   : > { %v690_v4 = vunpack.i.h.bf16 %v688_v61  ;;  %v689_v5 = vunpack.i.l.bf16 %v688_v61  ;;  %v297_v7 = vsel %vm295_vm7, %v772_v6, %v190_v0  ;;  %v302_v9 = vsel %vm299_vm8, %v298_v63, %v675_v46 }
  0x9a   : > { %v296_v11 = vsel %vm295_vm7, %v762_v1, %v189_v59  ;;  %v304_v2 = vsel %vm303_vm3, %v204_v8, %v219_v56  ;;  %v309_v15 = vsel %vm307_vm9, %v305_v3, %v234_v55  ;;  %v301_v18 = vsel %vm299_vm8, %v297_v7, %v205_v54 }
  0x9b   : > { %v248_v12 = vsel %vm247_vm6, %v242_v62, %v689_v5  ;;  %v314_v13 = vsel %vm311_vm10, %v310_v10, %v690_v4  ;;  %v249_v14 = vsel %vm247_vm6, %v689_v5, %v690_v4  ;;  %v308_v20 = vsel %vm307_vm9, %v304_v2, %v233_v60 }
  0x9c   : > { %v693_v6 = vpop.permute.xlu0 %692  ;;  %v257_v16 = vpop.permute.xlu1 %256  ;;  %v325_v17 = vpack.c.bf16 %v314_v13, %v302_v9  ;;  %v313_v19 = vsel %vm311_vm10, %v309_v15, %v249_v14  ;;  %v300_v21 = vsel %vm299_vm8, %v296_v11, %v204_v8  ;;  %v312_v22 = vsel %vm311_vm10, %v308_v20, %v248_v12 }
  0x9d   : > { %v324_v1 = vpack.c.bf16 %v313_v19, %v301_v18  ;;  %v694_v23 = vunpack.i.l.bf16 %v693_v6  ;;  %v323_v24 = vpack.c.bf16 %v312_v22, %v300_v21  ;;  %v695_v25 = vunpack.i.h.bf16 %v693_v6 }
  0x9e   : > { %638 = vmatprep.subr.bf16.mxu1 %v325_v17 }
  0x9f   : > { %385 = vmatprep.subr.bf16.mxu0 %v324_v1  ;;  %639 = vmatpush3.bf16.msra.mxu1 %v325_v17  ;;  %v263_v30 = vsel %vm262_vm11, %v257_v16, %v694_v23  ;;  %v264_v32 = vsel %vm262_vm11, %v694_v23, %v695_v25  ;;  %v318_v40 = vsel %vm315_vm13, %v690_v4, %v695_v25 }
  0xa0   : > { %v698_v26 = vpop.permute.xlu0 %697  ;;  %386 = vmatpush1.bf16.msra.mxu0 %v323_v24  ;;  %v272_v27 = vpop.permute.xlu1 %271  ;;  %v316_v41 = vsel %vm315_vm13, %v248_v12, %v263_v30  ;;  %v317_v44 = vsel %vm315_vm13, %v249_v14, %v264_v32 }
  0xa1   : > { %v700_v28 = vunpack.i.h.bf16 %v698_v26  ;;  %v699_v29 = vunpack.i.l.bf16 %v698_v26 }
  0xa3   : > { %v278_v34 = vsel %vm277_vm12, %v272_v27, %v699_v29  ;;  %v279_v37 = vsel %vm277_vm12, %v699_v29, %v700_v28  ;;  %v322_v45 = vsel %vm319_vm14, %v318_v40, %v700_v28 }
  0xa4   : > { %v703_v38 = vpop.permute.xlu0 %702  ;;  %v284_v39 = vpop.permute.xlu1 %283  ;;  %v320_v46 = vsel %vm319_vm14, %v316_v41, %v278_v34  ;;  %v321_v51 = vsel %vm319_vm14, %v317_v44, %v279_v37 }
  0xa5   : > { %v705_v42 = vunpack.i.h.bf16 %v703_v38  ;;  %v704_v43 = vunpack.i.l.bf16 %v703_v38 }
  0xa7   : > { %v328_v48 = vpack.c.bf16 %v705_v42, %v322_v45  ;;  %v291_v49 = vsel %vm289_vm15, %v704_v43, %v705_v42  ;;  %v290_v50 = vsel %vm289_vm15, %v284_v39, %v704_v43 }
  0xa8   : > { %v326_v52 = vpack.c.bf16 %v290_v50, %v320_v46  ;;  %v327_v53 = vpack.c.bf16 %v291_v49, %v321_v51 }
  0xa9   : > { %v383_v54 = vand.u32 %v375_v47, %v328_v48 }
  0xaa   : > { %v380_v55 = vand.u32 %v375_v47, %v327_v53  ;;  %v377_v56 = vand.u32 %v375_v47, %v326_v52 }
  0xab   : > { %640 = vmatprep.subr.bf16.mxu1 %v383_v54 }
  0xac   : > { %387 = vmatprep.subr.bf16.mxu0 %v380_v55  ;;  %641 = vmatpush3.bf16.msra.mxu1 %v383_v54 }
  0xad   : > { %388 = vmatpush1.bf16.msra.mxu0 %v377_v56 }
  0xaf   : > { %643 = vmatmul.mubr.msk.bf16.vlgmr.msra.gmra.mrb[0].mxu1 %vm367_vm0, %v709_v57 }
  0xb0   : > { %612 = vmatmul.mubr.msk.bf16.vlgmr.msra.gmra.mrb[0].mxu0 %vm367_vm0, %v796_v31 }
  0xb1   : > { %427 = vmatprep.mubr.bf16.mxu0 %v725_v33 }
  0xb5   : > { %v345_v58 = vpop.permute.xlu1 %344  ;;  %v340_v59 = vpop.permute.xlu0 %339 }
  0xb8   : > { %613 = vmatmul.mubr.msk.bf16.gmra.mrb[4].mxu0 %vm367_vm0, %v709_v57 }
  0xb9   : > { %v350_v60 = vpop.permute.xlu1 %349  ;;  %v355_v62 = vpop.permute.xlu0 %354 }
 0x182   : > { %v644_v61 = vpop.f32.mrb[0].mxu1 }
 0x183   : > { %v419_v63 = vpop.f32.mrb[0].mxu0  ;;  %v472_v0 = vpop.f32.mrb[1].mxu1  ;;  %v481_v3 = vadd.f32 %v644_v61, %v350_v60 }
 0x184   : > { %v420_v4 = vadd.f32 %v419_v63, %v340_v59  ;;  %v421_v5 = vpop.f32.mrb[1].mxu0  ;;  %v473_v7 = vadd.f32 %v472_v0, %v340_v59  ;;  %v645_v8 = vpop.f32.mrb[2].mxu1 }
 0x185   : > { %v422_v9 = vadd.f32 %v421_v5, %v340_v59  ;;  %v423_v10 = vpop.f32.mrb[2].mxu0  ;;  %v484_v31 = vadd.f32 %v645_v8, %v355_v62  ;;  %v495_v33 = vmax.f32 %v481_v3, 0.0  ;;  %v475_v11 = vpop.f32.mrb[3].mxu1 }
 0x186   : > { %v487_v2 = vmax.f32 %v420_v4, 0.0  ;;  %v424_v12 = vadd.f32 %v423_v10, %v345_v58  ;;  %v425_v13 = vpop.f32.mrb[3].mxu0  ;;  %v489_v14 = vmax.f32 %v473_v7, 0.0  ;;  %v476_v15 = vadd.f32 %v475_v11, %v345_v58 }
 0x187   : > { %v488_v6 = vmax.f32 %v422_v9, 0.0  ;;  %v426_v16 = vadd.f32 %v425_v13, %v345_v58  ;;  %v498_v17 = vmax.f32 %v484_v31, 0.0  ;;  %v631_v18 = vpack.c.bf16 %v495_v33, %v495_v33 }
 0x188   : > { %v490_v19 = vmax.f32 %v424_v12, 0.0  ;;  %v627_v20 = vpack.c.bf16 %v489_v14, %v489_v14  ;;  %v492_v1 = vmax.f32 %v476_v15, 0.0 }
 0x189   : > { %v626_v21 = vpack.c.bf16 %v488_v6, %v487_v2  ;;  %v491_v22 = vmax.f32 %v426_v16, 0.0  ;;  %v633_v23 = vpack.c.bf16 %v498_v17, %v498_v17  ;;  %545 = vst.msk [vmem:[%s170_s15 + $0x20] sm:$0xf] %vm540_vm1, %v631_v18 }
 0x18a   : > { %541 = vst.msk [vmem:[%s170_s15 + $0x8] sm:$0xf] %vm540_vm1, %v627_v20  ;;  %v629_v24 = vpack.c.bf16 %v492_v1, %v492_v1 }
 0x18b   : > { %539 = vst [vmem:[%s170_s15] sm:$0xff] %v626_v21  ;;  %v628_v25 = vpack.c.bf16 %v491_v22, %v490_v19  ;;  %547 = vst.msk [vmem:[%s170_s15 + $0x2c] sm:$0xf] %vm540_vm1, %v633_v23  ;;  %v429_v26 = vpop.f32.mrb[4].mxu0 }
 0x18c   : > { %543 = vst.msk [vmem:[%s170_s15 + $0x14] sm:$0xf] %vm540_vm1, %v629_v24  ;;  %v430_v27 = vadd.f32 %v429_v26, %v350_v60  ;;  %v431_v28 = vpop.f32.mrb[5].mxu0 }
 0x18d   : > { %542 = vst [vmem:[%s170_s15 + $0xc] sm:$0xff] %v628_v25  ;;  %v432_v29 = vadd.f32 %v431_v28, %v350_v60  ;;  %v433_v30 = vpop.f32.mrb[6].mxu0 }
 0x18e   : > { %v493_v32 = vmax.f32 %v430_v27, 0.0  ;;  %v434_v34 = vadd.f32 %v433_v30, %v355_v62  ;;  %v435_v35 = vpop.f32.mrb[7].mxu0 }
 0x18f   : > { %v494_v36 = vmax.f32 %v432_v29, 0.0  ;;  %v436_v37 = vadd.f32 %v435_v35, %v355_v62 }
 0x190   : > { %v496_v38 = vmax.f32 %v434_v34, 0.0 }
 0x191   : > { %v630_v39 = vpack.c.bf16 %v494_v36, %v493_v32  ;;  %v497_v40 = vmax.f32 %v436_v37, 0.0 }
 0x193   : > { %544 = vst [vmem:[%s170_s15 + $0x18] sm:$0xff] %v630_v39  ;;  %v632_v41 = vpack.c.bf16 %v497_v40, %v496_v38 }
 0x195   : > { %546 = vst [vmem:[%s170_s15 + $0x24] sm:$0xff] %v632_v41 }
 0x196 PF: > { %s13_s12 = sadd.s32 1, %s716_s12  }
 0x197   : > { %p10_p4 = scmp.ge.s32.totalorder %s13_s12, 4  }
 0x199   :  { %12 = sbr.rel (!%p10_p4) target bundleno = 1 (0x1), region = 62 }

// kernel: forward.3
= control target key start
LH: loop header
LB: loop body
LE: loop exit
PB: predicated region body
PF: predicated region fallthrough
CT: control target
= control target key end

     0   :  { %s1562_s0 = inlined_call_operand.vmem [shape: f32[2], index: 0, kind: input, shape index: {}]   ;;  %s1563_s1 = inlined_call_operand.<no memory space> [shape: f32[1], index: 1, kind: input, shape index: {}]   ;;  %s1564_s2 = inlined_call_operand.vmem [shape: f32[2], index: 2, kind: input, shape index: {}]   ;;  %s1565_s3 = inlined_call_operand.vmem [shape: bf16[2,32,256], index: 3, kind: input, shape index: {}]   ;;  %s1566_s4 = inlined_call_operand.vmem [shape: bf16[2,2,256], index: 4, kind: input, shape index: {}]   ;;  %s1567_s5 = inlined_call_operand.vmem [shape: f32[2,32,1], index: 5, kind: input, shape index: {}]   ;;  %s1568_s6 = inlined_call_operand.vmem [shape: f32[2,2,32], index: 6, kind: input, shape index: {}]   ;;  %s1569_s7 = inlined_call_operand.vmem [shape: f32[32,2], index: 7, kind: input, shape index: {}]   ;;  %s1570_s8 = inlined_call_operand.vmem [shape: f32[32,1], index: 8, kind: input, shape index: {}]   ;;  %s1571_s9 = inlined_call_operand.vmem [shape: f32[2,1,256], index: 9, kind: output, shape index: {0}]   ;;  %s1572_s10 = inlined_call_operand.vmem [shape: bf16[2,32,256], index: 10, kind: output, shape index: {1}]  }
   0x1   :  { %1576 = sst [smem:[#allocation9_spill]] %s1562_s0 }
   0x2   :  { %1577 = sst [smem:[#allocation10_spill]] %s1564_s2 }
   0x3   :  { %16 = sst [smem:[#allocation2]] %s1563_s1 }
   0x4   :  { %17 = vsyncpa [#allocation4], 0 }
   0x5   :  { %18 = vsyncpa [#allocation6], 0  ;;  %s1343_s15 = smov 0   ;;  %s1345_s16 = smov 0  }
   0x6   :  { %s1347_s17 = smov 0  }
   0x7 LB: > { %s1108_s1 = sadd.s32 4294967295, %s1275_s17   ;;  %s36_s18 = sadd.s32 1, %s1271_s16  ;;  %s1275_s17 = sphi %s1347_s17, %s24_s17   ;;  %s1271_s16 = sphi %s1345_s16, %s1586_s16   ;;  %s1267_s15 = sphi %s1343_s15, %s1585_s15  }
   0x8   : > { %p38_p0 = scmp.ge.s32.totalorder %s36_s18, 2  ;;  %p1110_p1 = scmp.ge.s32.totalorder %s1275_s17, 1 }
   0x9   : > { %p310_p2 = scmp.lt.s32.totalorder %s1275_s17, 3  ;;  %p1368_p4 = scmp.eq.s32.totalorder %s1108_s1, 0 }
   0xa   : > { %s1588_s18 = smov (%p38_p0, %s36_s18), 0  ;;  %s1580_s0 = sld [smem:[#allocation9_spill]] }
   0xb   : > { %p1364_p3 = pnand %p1110_p1, %p310_p2  ;;  %s1581_s2 = sld [smem:[#allocation10_spill]] }
   0xc   : > { %s1579_s20 = scalar_select %p1368_p4, 1, 0 }
   0xd   : > { %s1578_s19 = scalar_select %p1364_p3, 1, 0 }
   0xe   : > { %p1158_p5 = pneg %p1364_p3 }
  0x10   : > { %s323_s23 = sshll.u32 %s1580_s0, 4  ;;  %p1382_p6 = pnand %p1368_p4, %p1158_p5  ;;  %s324_s23 = int_to_ptr.vmem [resolvable:$true] %s323_s23 }
  0x11   : > { %s337_s26 = sshll.u32 %s1581_s2, 4  ;;  %s1215_s28 = scalar_lea.vmem %s324_s23, 16  ;;  %s338_s26 = int_to_ptr.vmem [resolvable:$true] %s337_s26 }
  0x12   : > { %p1216_p7 = scmp.ne.s32.totalorder %s324_s23, %s1215_s28  ;;  %p1217_p8 = pneg %p1382_p6 }
  0x13   : > { %p1223_p11 = scmp.lt.s32.totalorder %s324_s23, %s324_s23  ;;  %p1224_p12 = scmp.lt.s32.totalorder %s1215_s28, %s1215_s28 }
  0x14   : > { %p1218_p9 = pnand %p1217_p8, %p1216_p7 }
  0x15   : > { %p1225_p13 = por %p1224_p12, %p1223_p11 }
  0x16   : > { %p1219_p10 = pneg %p1218_p9 }
  0x18   : > { %p1226_p0 = pnand %p1225_p13, %p1219_p10 }
  0x1a   : > { %1229 = shalt.err (!%p1226_p0)
}
  0x1b   : > { %s1277_s29 = smov [#allocation3]   ;;  %s1230_s30 = scalar_lea.vmem %s338_s26, 16 }
  0x1c   : > { %1161 = dma.vmem_to_smem (!%p1382_p6), %s324_s23, 16, %s1277_s29, [#allocation4]  }
  0x1d   : > { %p1231_p1 = scmp.ne.s32.totalorder %s338_s26, %s1230_s30  ;;  %p1238_p4 = scmp.lt.s32.totalorder %s338_s26, %s338_s26 }
  0x1e   : > { %p1239_p3 = scmp.lt.s32.totalorder %s1230_s30, %s1230_s30 }
  0x1f   : > { %p1233_p2 = pnand %p1231_p1, %p1217_p8 }
  0x20   : > { %p1240_p7 = por %p1239_p3, %p1238_p4 }
  0x21   : > { %p1234_p5 = pneg %p1233_p2 }
  0x23   : > { %p1241_p9 = pnand %p1240_p7, %p1234_p5 }
  0x25   : > { %1244 = shalt.err (!%p1241_p9)
}
  0x26   : > { %s1278_s11 = smov [#allocation5]   ;;  %p1583_p10 = scmp.ne.s32.totalorder %s1578_s19, 0 }
  0x27   : > { %1164 = dma.vmem_to_smem (!%p1382_p6), %s338_s26, 16, %s1278_s11, [#allocation6]  }
  0x28   : > { %396 = sbr.rel (%p1583_p10) target bundleno = 498 (0x1f2), region = 56  ;;  %p1584_p11 = scmp.ne.s32.totalorder (!%p1583_p10), %s1579_s20, 0 }
  0x2f   : > { %1258 = dma.done.wait (%p1584_p11), [#allocation4], 16  }
  0x30   : > { %1260 = vsyncadd (%p1584_p11), [#allocation4], 4294967280 }
  0x31   : > { %1262 = dma.done.wait (%p1584_p11), [#allocation6], 16  }
  0x32   : > { %1264 = vsyncadd (%p1584_p11), [#allocation6], 4294967280 }
  0x33   : > { %406 = sfence }
  0x34   : > { %p473_p3 = scmp.lt.s32.totalorder %s1267_s15, 1  ;;  %s1404_s12 = sld [smem:[#allocation3 + %s1267_s15]] }
  0x36   : > { %s474_s13 = scalar_select %p473_p3, %s1267_s15, 1 }
  0x38   : > { %s1135_s14 = sshll.u32 %s474_s13, 5  ;;  %s1407_s1 = sshll.u32 %s474_s13, 1 }
  0x39   : > { %s1412_s20 = scalar_lea.vmem %s1565_s3, %s1135_s14  ;;  %s489_s24 = scalar_lea.vmem %s1566_s4, %s1407_s1 }
  0x3a   : > { %s1421_s27 = scalar_lea.vmem %s1567_s5, %s1135_s14  ;;  %s499_s30 = scalar_lea.vmem %s1568_s6, %s1407_s1 }
  0x3b   : > { %s1431_s19 = scalar_lea.vmem %s1571_s9, %s1407_s1  ;;  %s1436_s2 = scalar_lea.vmem %s1572_s10, %s1135_s14 }
  0x3c   : > { %p521_p4 = scmp.ne.f32.partialorder %s1404_s12, 0.0 }
  0x3d   : > { %v550_v0 = vld [vmem:[%s1569_s7 + $0x10] sm:$0xff] (%p521_p4)  ;;  %v548_v1 = vld [vmem:[%s1569_s7] sm:$0xff] (%p521_p4)  ;;  %v1279_v2 = vmov (%p521_p4), 1   ;;  %v549_v3 = vld [vmem:[%s1569_s7 + $0x8] sm:$0xff] (%p521_p4)  ;;  %v1280_v4 = vmov (%p521_p4), 0   ;;  %v1281_v14 = vmov (%p521_p4), 0.0   ;;  %v573_v15 = vlaneseq (%p521_p4) }
  0x3e   : > { %524 = sbr.rel (!%p521_p4) target bundleno = 489 (0x1e9), region = 68  ;;  %1203 = vset.pattern.permute.xlu0 (%p521_p4), %v1279_v2  ;;  %1201 = vset.pattern.permute.xlu1 (%p521_p4), %v1279_v2  ;;  %v551_v5 = vld [vmem:[%s1569_s7 + $0x18] sm:$0xff] (%p521_p4)  ;;  %v658_v6 = vld [vmem:[%s1570_s8 + $0x8] sm:$0xff] (%p521_p4)  ;;  %v657_v7 = vld [vmem:[%s1570_s8] sm:$0xff] (%p521_p4)  ;;  %v1489_v35 = vstv (%p521_p4), %s1404_s12  ;;  %vm690_vm0 = vcmask (%p521_p4), 261120   ;;  %s1521_s14 = sld [smem:[#allocation2]] (%p521_p4) }
  0x3f   : > { %616 = vperm.xlu0 (%p521_p4), %1203, %v550_v0   ;;  %608 = vperm.xlu1 (%p521_p4), %1201, %v548_v1   ;;  %v777_v8 = vld [vmem:[%s1421_s27] sm:$0xff] (%p521_p4)  ;;  %v659_v9 = vld [vmem:[%s1570_s8 + $0x10] sm:$0xff] (%p521_p4)  ;;  %v660_v11 = vld [vmem:[%s1570_s8 + $0x18] sm:$0xff] (%p521_p4)  ;;  %v1468_v16 = vshrl.u32 (%p521_p4), %v573_v15, 7  ;;  %vm900_vm1 = vcmp.lt.s32.totalorder (%p521_p4), %v573_v15, 256 }
  0x40   : > { %v779_v10 = vld [vmem:[%s1421_s27 + $0x10] sm:$0xff] (%p521_p4)  ;;  %v778_v12 = vld [vmem:[%s1421_s27 + $0x8] sm:$0xff] (%p521_p4)  ;;  %v780_v13 = vld [vmem:[%s1421_s27 + $0x18] sm:$0xff] (%p521_p4)  ;;  %758 = vmatprep.mubr.f32.mxu0 (%p521_p4), %v1281_v14  ;;  %s861_s27 = sld [smem:[#allocation5 + %s1267_s15]] (%p521_p4) }
  0x41   : > { %v546_v17 = vld [vmem:[%s489_s24] sm:$0x3] (%p521_p4)  ;;  %v1476_v18 = vsub.s32 (%p521_p4), 0, %v1468_v16  ;;  %v579_v19 = vsub.s32 (%p521_p4), 2, %v1468_v16  ;;  %v625_v26 = vsub.s32 (%p521_p4), 1, %v1468_v16  ;;  %v629_v27 = vsub.s32 (%p521_p4), 3, %v1468_v16 }
  0x42   : > { %v547_v20 = vunpack.c.l.bf16 (%p521_p4), %v546_v17  ;;  %v525_v25 = vld [vmem:[%s1412_s20] sm:$0xff] (%p521_p4)  ;;  %v526_v28 = vld [vmem:[%s1412_s20 + $0x8] sm:$0xff] (%p521_p4)  ;;  %v527_v50 = vld [vmem:[%s1412_s20 + $0x10] sm:$0xff] (%p521_p4) }
  0x43   : > { %1204 = vset.pattern.permute.xlu0 (%p521_p4), %v1280_v4  ;;  %612 = vperm.xlu1 (%p521_p4), %1201, %v549_v3   ;;  %v529_v31 = vunpack.c.l.bf16 (%p521_p4), %v525_v25  ;;  %v530_v32 = vunpack.c.h.bf16 (%p521_p4), %v525_v25  ;;  %v531_v36 = vunpack.c.l.bf16 (%p521_p4), %v526_v28  ;;  %v532_v37 = vunpack.c.h.bf16 (%p521_p4), %v526_v28  ;;  %v528_v53 = vld [vmem:[%s1412_s20 + $0x18] sm:$0xff] (%p521_p4) }
  0x44   : > { %554 = vperm.xlu0 (%p521_p4), %1204, %v548_v1   ;;  %v576_v23 = vrot.slane (%p521_p4), %v547_v20, %v1476_v18  ;;  %v580_v24 = vrot.slane (%p521_p4), %v547_v20, %v579_v19  ;;  %v626_v38 = vrot.slane (%p521_p4), %v547_v20, %v625_v26  ;;  %v630_v39 = vrot.slane (%p521_p4), %v547_v20, %v629_v27 }
  0x45   : > { %v538_v40 = vmul.f32 %v1489_v35, %v529_v31  ;;  %v539_v41 = vmul.f32 %v1489_v35, %v530_v32  ;;  %v540_v46 = vmul.f32 %v1489_v35, %v531_v36  ;;  %v541_v47 = vmul.f32 %v1489_v35, %v532_v37 }
  0x46   : > { %v586_v33 = vrot.slane %v576_v23, %v1476_v18  ;;  %v590_v34 = vrot.slane %v580_v24, %v1476_v18  ;;  %v636_v51 = vrot.slane %v626_v38, %v625_v26  ;;  %v640_v52 = vrot.slane %v630_v39, %v625_v26 }
  0x47   : > { %1202 = vset.pattern.permute.xlu1 %v1280_v4  ;;  %v533_v57 = vunpack.c.l.bf16 %v527_v50  ;;  %v534_v58 = vunpack.c.h.bf16 %v527_v50  ;;  %v536_v1 = vunpack.c.h.bf16 %v528_v53 }
  0x48   : > { %559 = vperm.xlu0 %1204, %v549_v3   ;;  %569 = vperm.xlu1 %1202, %v551_v5  }
  0x49   : > { %v545_v14 = vmul.f32 %v1489_v35, %v536_v1 }
  0x4c   : > { %564 = vperm.xlu0 %1204, %v550_v0   ;;  %1205 = vset.pattern.permute.xlu1 %v1279_v2  ;;  %v535_v0 = vunpack.c.l.bf16 %v528_v53 }
  0x4d   : > { %620 = vperm.xlu1 %1205, %v551_v5   ;;  %v543_v5 = vmul.f32 %v1489_v35, %v534_v58 }
  0x50   : > { %668 = vperm.xlu0 %1204, %v658_v6  }
  0x51   : > { %1206 = vset.pattern.permute.xlu1 %v1280_v4  ;;  %v542_v4 = vmul.f32 %v1489_v35, %v533_v57 }
  0x52   : > { %663 = vperm.xlu1 %1206, %v657_v7  }
  0x54   : > { %783 = vperm.xlu0 %1204, %v777_v8  }
  0x56   : > { %673 = vperm.xlu1 %1206, %v659_v9  }
  0x58   : > { %793 = vperm.xlu0 %1204, %v779_v10  }
  0x5a   : > { %678 = vperm.xlu1 %1206, %v660_v11  }
  0x5e   : > { %788 = vperm.xlu1 %1206, %v778_v12  }
  0x62   : > { %798 = vperm.xlu1 %1206, %v780_v13   ;;  %v544_v13 = vmul.f32 %v1489_v35, %v535_v0 }
  0xbe   : > { %v609_v21 = vpop.permute.xlu1 %608  ;;  %v1479_v22 = vpop.permute.xlu0 %616 }
  0xbf   : > { %v641_v62 = vmul.f32 %v636_v51, %v609_v21  ;;  %v642_v63 = vmul.f32 %v640_v52, %v609_v21 }
  0xc2   : > { %v613_v29 = vpop.permute.xlu1 %612 }
  0xc3   : > { %v555_v30 = vpop.permute.xlu0 %554  ;;  %v643_v2 = vmul.f32 %v636_v51, %v613_v29  ;;  %v644_v3 = vmul.f32 %v640_v52, %v613_v29 }
  0xc4   : > { %v591_v42 = vmul.f32 %v586_v33, %v555_v30  ;;  %v592_v43 = vmul.f32 %v590_v34, %v555_v30 }
  0xc6   : > { %v599_v54 = vadd.f32 %v591_v42, %v538_v40  ;;  %v600_v55 = vadd.f32 %v592_v43, %v539_v41 }
  0xc7   : > { %v560_v44 = vpop.permute.xlu0 %559  ;;  %v570_v45 = vpop.permute.xlu1 %569 }
  0xc8   : > { %v593_v48 = vmul.f32 %v586_v33, %v560_v44  ;;  %v594_v49 = vmul.f32 %v590_v34, %v560_v44  ;;  %v649_v7 = vadd.f32 %v641_v62, %v599_v54  ;;  %v650_v8 = vadd.f32 %v642_v63, %v600_v55 }
  0xc9   : > { %v597_v17 = vmul.f32 %v586_v33, %v570_v45  ;;  %v598_v19 = vmul.f32 %v590_v34, %v570_v45 }
  0xca   : > { %v601_v59 = vadd.f32 %v593_v48, %v540_v46  ;;  %v602_v60 = vadd.f32 %v594_v49, %v541_v47 }
  0xcb   : > { %v565_v56 = vpop.permute.xlu0 %564  ;;  %v605_v36 = vadd.f32 %v597_v17, %v544_v13  ;;  %v606_v37 = vadd.f32 %v598_v19, %v545_v14 }
  0xcc   : > { %v621_v61 = vpop.permute.xlu1 %620  ;;  %v595_v9 = vmul.f32 %v586_v33, %v565_v56  ;;  %v596_v10 = vmul.f32 %v590_v34, %v565_v56  ;;  %v651_v11 = vadd.f32 %v643_v2, %v601_v59  ;;  %v652_v12 = vadd.f32 %v644_v3, %v602_v60 }
  0xcd   : > { %v647_v26 = vmul.f32 %v636_v51, %v621_v61  ;;  %v648_v27 = vmul.f32 %v640_v52, %v621_v61  ;;  %v645_v33 = vmul.f32 %v636_v51, %v1479_v22  ;;  %v646_v34 = vmul.f32 %v640_v52, %v1479_v22  ;;  %v689_v22 = vld [vmem:[%s499_s30] sm:$0x3] }
  0xce   : > { %v603_v28 = vadd.f32 %v595_v9, %v542_v4  ;;  %v604_v29 = vadd.f32 %v596_v10, %v543_v5  ;;  %v862_v59 = vstv %s861_s27  ;;  %v874_v4 = vstv %s1521_s14 }
  0xcf   : > { %v669_v6 = vpop.permute.xlu0 %668  ;;  %v655_v40 = vadd.f32 %v647_v26, %v605_v36  ;;  %v656_v41 = vadd.f32 %v648_v27, %v606_v37  ;;  %v1282_v5 = vmov 1966171168  }
  0xd0   : > { %v1501_v21 = vadd.f32 %v669_v6, %v651_v11  ;;  %v1503_v23 = vadd.f32 %v669_v6, %v652_v12  ;;  %v653_v38 = vadd.f32 %v645_v33, %v603_v28  ;;  %v654_v39 = vadd.f32 %v646_v34, %v604_v29 }
  0xd1   : > { %v664_v20 = vpop.permute.xlu1 %663  ;;  %v883_v6 = vunpack.c.l.s4 %v1282_v5 }
  0xd2   : > { %v1505_v24 = vadd.f32 %v664_v20, %v649_v7  ;;  %v1507_v25 = vadd.f32 %v664_v20, %v650_v8 }
  0xd3   : > { %v784_v57 = vpop.permute.xlu0 %783 }
  0xd4   : > { %v1142_v30 = vpack.c.bf16 %v1503_v23, %v1507_v25  ;;  %v1144_v31 = vpack.c.bf16 %v1501_v21, %v1505_v24 }
  0xd5   : > { %v674_v32 = vpop.permute.xlu1 %673 }
  0xd6   : > { %1143 = vmatprep.subr.bf16.mxu0 %v1142_v30  ;;  %v685_v43 = vadd.f32 %v674_v32, %v653_v38  ;;  %v686_v44 = vadd.f32 %v674_v32, %v654_v39 }
  0xd7   : > { %1145 = vmatpush1.bf16.msra.mxu0 %v1144_v31  ;;  %v794_v0 = vpop.permute.xlu0 %793 }
  0xd9   : > { %v679_v42 = vpop.permute.xlu1 %678 }
  0xda   : > { %v687_v45 = vadd.f32 %v679_v42, %v655_v40  ;;  %v688_v46 = vadd.f32 %v679_v42, %v656_v41  ;;  %v884_v42 = vunpack.c.0.s8 %v883_v6 }
  0xdc   : > { %v1146_v47 = vpack.c.bf16 %v688_v46, %v686_v44  ;;  %v1148_v48 = vpack.c.bf16 %v687_v45, %v685_v43 }
  0xdd   : > { %v789_v58 = vpop.permute.xlu1 %788 }
  0xde   : > { %1147 = vmatprep.subr.bf16.mxu0 %v1146_v47 }
  0xdf   : > { %1149 = vmatpush1.bf16.msra.mxu0 %v1148_v48  ;;  %v887_v48 = vsub.s32 %v884_v42, %v1468_v16 }
  0xe1   : > { %v799_v1 = vpop.permute.xlu1 %798 }
  0xe2   : > { %1126 = vmatmul.mubr.msk.f32.vlgmr.msra.gmra.mrb[0].mxu0 %vm690_vm0, %v689_v22 }
 0x1b5   : > { %v760_v49 = vpop.f32.mrb[0].mxu0 }
 0x1b6   : > { %v1127_v50 = vmul.f32 -1.442695, %v760_v49  ;;  %v762_v51 = vpop.f32.mrb[1].mxu0 }
 0x1b7   : > { %v1128_v52 = vmul.f32 -1.442695, %v762_v51 }
 0x1b8   : > { %1207 = vpow2.f32 %v1127_v50 }
 0x1b9   : > { %1209 = vpow2.f32 %v1128_v52 }
 0x1c2   : > { %v1208_v53 = vpop.eup %1207 }
 0x1c3   : > { %v1210_v54 = vpop.eup %1209  ;;  %v771_v55 = vadd.f32 1.0, %v1208_v53 }
 0x1c4   : > { %v772_v56 = vadd.f32 1.0, %v1210_v54 }
 0x1c5   : > { %1211 = vrcp.f32 %v771_v55 }
 0x1c6   : > { %1213 = vrcp.f32 %v772_v56 }
 0x1cf   : > { %v1212_v60 = vpop.eup %1211 }
 0x1d0   : > { %v1214_v61 = vpop.eup %1213  ;;  %v804_v62 = vrot.slane %v1212_v60, %v1476_v18  ;;  %v863_v63 = vmul.f32 %v1212_v60, %v862_v59 }
 0x1d1   : > { %v808_v2 = vrot.slane %v1214_v61, %v1476_v18  ;;  %v864_v3 = vmul.f32 %v1214_v61, %v862_v59 }
 0x1d2   : > { %v809_v7 = vmul.f32 %v804_v62, %v784_v57  ;;  %v811_v8 = vmul.f32 %v804_v62, %v789_v58  ;;  %v813_v9 = vmul.f32 %v804_v62, %v794_v0  ;;  %v815_v10 = vmul.f32 %v804_v62, %v799_v1 }
 0x1d3   : > { %v867_v11 = vrot.slane %v863_v63, 7  ;;  %v810_v12 = vmul.f32 %v808_v2, %v784_v57  ;;  %v812_v13 = vmul.f32 %v808_v2, %v789_v58  ;;  %v814_v14 = vmul.f32 %v808_v2, %v794_v0 }
 0x1d4   : > { %v817_v17 = vadd.f32 %v809_v7, %v1505_v24  ;;  %v819_v19 = vadd.f32 %v811_v8, %v1501_v21  ;;  %v821_v20 = vadd.f32 %v813_v9, %v685_v43  ;;  %v823_v26 = vadd.f32 %v815_v10, %v687_v45 }
 0x1d5   : > { %v871_v27 = vadd.f32 %v867_v11, %v760_v49  ;;  %v816_v18 = vmul.f32 %v808_v2, %v799_v1  ;;  %v818_v28 = vadd.f32 %v810_v12, %v1507_v25  ;;  %v820_v29 = vadd.f32 %v812_v13, %v1503_v23 }
 0x1d6   : > { %v825_v30 = vmul.f32 %v817_v17, %v1489_v35  ;;  %v827_v31 = vmul.f32 %v819_v19, %v1489_v35  ;;  %v829_v32 = vmul.f32 %v821_v20, %v1489_v35  ;;  %v831_v33 = vmul.f32 %v823_v26, %v1489_v35 }
 0x1d7   : > { %v822_v24 = vadd.f32 %v814_v14, %v686_v44  ;;  %v824_v21 = vadd.f32 %v816_v18, %v688_v46  ;;  %v826_v34 = vmul.f32 %v818_v28, %v1489_v35  ;;  %v828_v36 = vmul.f32 %v820_v29, %v1489_v35 }
 0x1d8   : > { %v868_v25 = vrot.slane %v864_v3, 7  ;;  %v875_v23 = vadd.f32 %v874_v4, %v871_v27 }
 0x1d9   : > { %v830_v37 = vmul.f32 %v822_v24, %v1489_v35  ;;  %v832_v38 = vmul.f32 %v824_v21, %v1489_v35  ;;  %v1138_v39 = vpack.c.bf16 %v826_v34, %v825_v30  ;;  %v1139_v40 = vpack.c.bf16 %v828_v36, %v827_v31 }
 0x1da   : > { %v872_v41 = vadd.f32 %v868_v25, %v762_v51  ;;  %v877_v46 = vmul.f32 %v875_v23, %v1489_v35 }
 0x1db   : > { %v1140_v43 = vpack.c.bf16 %v830_v37, %v829_v32  ;;  %v1141_v44 = vpack.c.bf16 %v832_v38, %v831_v33  ;;  %857 = vst [vmem:[%s1436_s2] sm:$0xff] %v1138_v39  ;;  %858 = vst [vmem:[%s1436_s2 + $0x8] sm:$0xff] %v1139_v40 }
 0x1dc   : > { %v876_v45 = vadd.f32 %v874_v4, %v872_v41 }
 0x1dd   : > { %859 = vst [vmem:[%s1436_s2 + $0x10] sm:$0xff] %v1140_v43  ;;  %860 = vst [vmem:[%s1436_s2 + $0x18] sm:$0xff] %v1141_v44 }
 0x1de   : > { %v878_v47 = vmul.f32 %v876_v45, %v1489_v35 }
 0x1e0   : > { %v881_v22 = vcombine.low %v877_v46, %v878_v47 }
 0x1e2   : > { %v888_v49 = vrot.slane %v881_v22, %v887_v48 }
 0x1e4   : > { %v889_v50 = vcombine.high %v888_v49, %v888_v49 }
 0x1e6   : > { %v896_v51 = vrot.slane %v889_v50, %v887_v48 }
 0x1e8   : > { %902 = vst.msk [vmem:[%s1431_s19] sm:$0x3] %vm900_vm1, %v896_v51 }
 0x1e9 PF: > { %p903_p6 = scmp.eq.f32.partialorder %s1404_s12, 0.0 }
 0x1ea   : > { %v911_v52 = vlaneseq (%p903_p6)  ;;  %v1283_v35 = vmov (%p903_p6), 0   ;;  %v1284_v16 = vmov (%p903_p6), 0.0  }
 0x1eb   : > { %906 = sbr.rel (!%p903_p6) target bundleno = 498 (0x1f2), region = 72  ;;  %907 = vst [vmem:[%s1436_s2] sm:$0xff] (%p903_p6), %v1283_v35  ;;  %908 = vst [vmem:[%s1436_s2 + $0x8] sm:$0xff] (%p903_p6), %v1283_v35 }
 0x1ec   : > { %909 = vst [vmem:[%s1436_s2 + $0x10] sm:$0xff] (%p903_p6), %v1283_v35  ;;  %910 = vst [vmem:[%s1436_s2 + $0x18] sm:$0xff] (%p903_p6), %v1283_v35  ;;  %vm913_vm2 = vcmp.lt.s32.totalorder (%p903_p6), %v911_v52, 256 }
 0x1ed   : > { %915 = vst.msk [vmem:[%s1431_s19] sm:$0x3] (%p903_p6), %vm913_vm2, %v1284_v16 }
 0x1f2 PF: > { %s24_s17 = sadd.s32 1, %s1275_s17   ;;  %s1585_s15 = smov %s1271_s16 }
 0x1f3   : > { %p21_p8 = scmp.ge.s32.totalorder %s24_s17, 4   ;;  %s1586_s16 = smov %s1588_s18 }
 0x1f5   :  { %23 = sbr.rel (!%p21_p8) target bundleno = 7 (0x7), region = 124 }
 0x1fc   :  { %969 = vsyncpa [#allocation4], 1 }
 0x1fd   :  { %971 = vsyncpa [#allocation4 + $0x1], 1 }
 0x1fe   :  { %972 = vsyncpa [#allocation6], 1 }

</bundles_post_ra>
